<compile_context>
chip_gen: v6e
topology: v6e:2x2x1
jax: 0.10.0
libtpu: 0.0.40
codegen_flags: <defaults>
</compile_context>

<pallas_src>
import functools

import jax
import jax.numpy as jnp
from jax.experimental import pallas as pl
from jax.experimental.pallas import tpu as pltpu


def _rnn_fused_kernel(x_ref,        # (TM, I)   fused (seq*batch) rows of input
                      w_in_ref,     # (I, H)    (pre-scaled by c when c > 0)
                      b_ref,        # (1, H)    fused bias (pre-scaled by c when c > 0)
                      w_fc_ref,     # (H, O)
                      b_fc_ref,     # (1, O)
                      h_ref,        # (TM, H)   out: rnn hidden per row
                      logits_ref,   # (TM, O)   out: fc(rnn hidden)
                      *, post_scale):
    # hidden is identically zero (reference never updates it), so the
    # recurrent matmul and the hidden*(1-c) term vanish.
    pre = jnp.dot(x_ref[...], w_in_ref[...],
                  preferred_element_type=jnp.float32) + b_ref[...]
    h = jnp.maximum(pre, 0.0)
    if post_scale != 1.0:           # only used on the degenerate c <= 0 path
        h = post_scale * h
    h_ref[...] = h.astype(h_ref.dtype)

    logits = jnp.dot(h, w_fc_ref[...],
                     preferred_element_type=jnp.float32) + b_fc_ref[...]
    logits_ref[...] = logits.astype(logits_ref.dtype)


def _pick_tiling(M, tm_target):
    """Pick an M tile (multiple of 8) that (a) is large to amortize grid-step
    overhead, (b) yields >= 2 grid steps when M > 8 (v7x dual-TC sharding),
    and (c) divides M exactly when possible (no pad / slice HBM passes)."""
    rt8 = lambda n: ((n + 7) // 8) * 8
    if M <= 8:
        TM = 8
    else:
        cap = max(8, min(int(tm_target), rt8(pl.cdiv(M, 2))))
        start = max(8, (cap // 8) * 8)
        TM = None
        for t in range(start, 7, -8):          # largest multiple of 8 dividing M
            if M % t == 0:
                TM = t
                break
        if TM is None:                         # fallback: pad the ragged tail
            TM = start
    M_pad = pl.cdiv(M, TM) * TM
    return TM, M_pad // TM, M_pad


def rnn_forward(x, params, tau, dt, *, tm=4096):
    """x: (S, B, I) float32.  Returns (logits (S,B,O), rnn_output (S,B,H))."""
    S, B, I = x.shape
    w_in, b_in, w_h, b_h, w_fc, b_fc = params
    H = w_in.shape[1]
    O = w_fc.shape[1]
    c = float(dt) / float(tau)

    # Fold the two biases (hidden path contributes only its bias, since h == 0)
    # and, when c > 0, fold c into W_in / bias:  c*relu(z) == relu(c*z).
    b_fused = (b_in + b_h).reshape(1, H).astype(jnp.float32)
    if c > 0.0:
        w_in_eff = (w_in * c).astype(jnp.float32)
        b_eff = b_fused * c
        post_scale = 1.0
    else:  # degenerate but keep exact semantics for any c
        w_in_eff = w_in.astype(jnp.float32)
        b_eff = b_fused
        post_scale = c

    # Fuse time and batch into one MXU/DMA-friendly M dimension.
    M = S * B
    x2 = x.reshape(M, I)

    TM, grid_m, M_pad = _pick_tiling(M, tm)
    if M_pad != M:
        x2 = jnp.pad(x2, ((0, M_pad - M), (0, 0)))

    kernel = functools.partial(_rnn_fused_kernel, post_scale=post_scale)

    grid_spec = pltpu.PrefetchScalarGridSpec(
        num_scalar_prefetch=0,
        grid=(grid_m,),
        in_specs=[
            pl.BlockSpec((TM, I), lambda m: (m, 0)),   # fused input rows
            pl.BlockSpec((I, H), lambda m: (0, 0)),    # W_in (resident, ~few KB)
            pl.BlockSpec((1, H), lambda m: (0, 0)),    # fused bias
            pl.BlockSpec((H, O), lambda m: (0, 0)),    # W_fc (resident)
            pl.BlockSpec((1, O), lambda m: (0, 0)),    # b_fc
        ],
        out_specs=[
            pl.BlockSpec((TM, H), lambda m: (m, 0)),   # rnn hidden (2-D)
            pl.BlockSpec((TM, O), lambda m: (m, 0)),   # logits     (2-D)
        ],
    )

    rnn_out2, logits2 = pl.pallas_call(
        kernel,
        out_shape=(
            jax.ShapeDtypeStruct((M_pad, H), jnp.float32),
            jax.ShapeDtypeStruct((M_pad, O), jnp.float32),
        ),
        grid_spec=grid_spec,
        compiler_params=pltpu.CompilerParams(
            # rows independent -> megacore / v7x dual-TC sharding over grid_m
            dimension_semantics=("parallel",)),
    )(x2, w_in_eff, b_eff, w_fc, b_fc)

    if M_pad != M:                     # only on the ragged-tail fallback path
        rnn_out2 = rnn_out2[:M]
        logits2 = logits2[:M]
    rnn_output = rnn_out2.reshape(S, B, H)
    logits = logits2.reshape(S, B, O)
    return logits, rnn_output


def init_params(key, input_size, hidden_size, output_size):
    """Deterministic nn.Linear-style init. Weights stored pre-transposed
    (fan_in, fan_out) so the kernel does x @ W directly."""
    ks = jax.random.split(key, 6)

    def linear(kw, kb, fan_in, fan_out):
        bound = 1.0 / jnp.sqrt(fan_in)
        w = jax.random.uniform(kw, (fan_in, fan_out), jnp.float32, -bound, bound)
        b = jax.random.uniform(kb, (1, fan_out), jnp.float32, -bound, bound)
        return w, b

    w_in, b_in = linear(ks[0], ks[1], input_size, hidden_size)
    w_h, b_h = linear(ks[2], ks[3], hidden_size, hidden_size)
    w_fc, b_fc = linear(ks[4], ks[5], hidden_size, output_size)
    return (w_in, b_in, w_h, b_h, w_fc, b_fc)


def rnn_forward_ref(x, params, tau, dt):
    """Pure-JAX reference reproducing the PyTorch code verbatim (hidden not updated)."""
    w_in, b_in, w_h, b_h, w_fc, b_fc = params
    c = dt / tau
    S, B, I = x.shape
    H = w_in.shape[1]
    hidden = jnp.zeros((B, H), jnp.float32)
    outs = []
    for s in range(S):
        pre = x[s] @ w_in + b_in + hidden @ w_h + b_h
        outs.append(hidden * (1 - c) + c * jax.nn.relu(pre))
    rnn_output = jnp.stack(outs, axis=0)
    logits = rnn_output @ w_fc + b_fc
    return logits, rnn_output


if __name__ == "__main__":
    input_size, hidden_size, output_size = 4, 32, 8
    seq, batch = 8, 2
    tau, dt = 2.0, 0.5

    key = jax.random.PRNGKey(0)
    k_x, k_p = jax.random.split(key)
    x = jax.random.normal(k_x, (seq, batch, input_size), dtype=jnp.float32)
    params = init_params(k_p, input_size, hidden_size, output_size)

    logits, rnn_output = rnn_forward(x, params, tau, dt)
    jax.block_until_ready((logits, rnn_output))

    logits_ref, rnn_output_ref = rnn_forward_ref(x, params, tau, dt)
    assert logits.shape == (seq, batch, output_size)
    assert rnn_output.shape == (seq, batch, hidden_size)
    assert jnp.allclose(logits, logits_ref, atol=1e-5)
    assert jnp.allclose(rnn_output, rnn_output_ref, atol=1e-5)

    print("KERNEL_OK")
</pallas_src>

<mosaic_0001>
module attributes {stable_mosaic.version = 11 : i64} {
  func.func @_rnn_fused_kernel(%arg0: i32, %arg1: memref<8x4xf32, #tpu.memory_space<vmem>>, %arg2: memref<4x32xf32, #tpu.memory_space<vmem>>, %arg3: memref<1x32xf32, #tpu.memory_space<vmem>>, %arg4: memref<32x8xf32, #tpu.memory_space<vmem>>, %arg5: memref<1x8xf32, #tpu.memory_space<vmem>>, %arg6: memref<8x32xf32, #tpu.memory_space<vmem>>, %arg7: memref<8x8xf32, #tpu.memory_space<vmem>>) attributes {dimension_semantics = [#tpu.dimension_semantics<parallel>], iteration_bounds = array<i64: 2>, scalar_prefetch = 0 : i64, scratch_operands = 0 : i64, tpu.core_type = #tpu.core_type<tc>, window_params = [{transform_indices = @transform_0, window_bounds = array<i64: 8, 4>}, {pipeline_mode = #tpu.pipeline_mode<synchronous>, transform_indices = @transform_1, window_bounds = array<i64: 4, 32>}, {pipeline_mode = #tpu.pipeline_mode<synchronous>, transform_indices = @transform_2, window_bounds = array<i64: 1, 32>}, {pipeline_mode = #tpu.pipeline_mode<synchronous>, transform_indices = @transform_3, window_bounds = array<i64: 32, 8>}, {pipeline_mode = #tpu.pipeline_mode<synchronous>, transform_indices = @transform_4, window_bounds = array<i64: 1, 8>}, {transform_indices = @transform_5, window_bounds = array<i64: 8, 32>}, {transform_indices = @transform_6, window_bounds = array<i64: 8, 8>}]} {
    %c0 = arith.constant 0 : index
    %c0_0 = arith.constant 0 : index
    %0 = vector.load %arg1[%c0, %c0_0] : memref<8x4xf32, #tpu.memory_space<vmem>>, vector<8x4xf32>
    %c0_1 = arith.constant 0 : index
    %c0_2 = arith.constant 0 : index
    %1 = vector.load %arg2[%c0_1, %c0_2] : memref<4x32xf32, #tpu.memory_space<vmem>>, vector<4x32xf32>
    %cst = arith.constant dense<0.000000e+00> : vector<8x32xf32>
    %2 = tpu.matmul %0, %1, %cst {dimension_numbers = #tpu.dot_dimension_numbers<[1], [0], [0], [1], [0, 0, 1, 1], [], []>} : vector<8x4xf32>, vector<4x32xf32>, vector<8x32xf32> -> vector<8x32xf32>
    %c0_3 = arith.constant 0 : index
    %c0_4 = arith.constant 0 : index
    %3 = vector.load %arg3[%c0_3, %c0_4] : memref<1x32xf32, #tpu.memory_space<vmem>>, vector<1x32xf32>
    %4 = vector.broadcast %3 : vector<1x32xf32> to vector<8x32xf32>
    %5 = arith.addf %2, %4 : vector<8x32xf32>
    %cst_5 = arith.constant 0.000000e+00 : f32
    %6 = vector.broadcast %cst_5 : f32 to vector<8x32xf32>
    %7 = arith.maximumf %5, %6 : vector<8x32xf32>
    %c0_6 = arith.constant 0 : index
    %c0_7 = arith.constant 0 : index
    %8 = vector.load %arg6[%c0_6, %c0_7] : memref<8x32xf32, #tpu.memory_space<vmem>>, vector<8x32xf32>
    tpu.vector_store %arg6[%c0_6, %c0_7], %7 {strides = array<i32>} : memref<8x32xf32, #tpu.memory_space<vmem>>, vector<8x32xf32>,
    %c0_8 = arith.constant 0 : index
    %c0_9 = arith.constant 0 : index
    %9 = vector.load %arg4[%c0_8, %c0_9] : memref<32x8xf32, #tpu.memory_space<vmem>>, vector<32x8xf32>
    %cst_10 = arith.constant dense<0.000000e+00> : vector<8x8xf32>
    %10 = tpu.matmul %7, %9, %cst_10 {dimension_numbers = #tpu.dot_dimension_numbers<[1], [0], [0], [1], [0, 0, 1, 1], [], []>} : vector<8x32xf32>, vector<32x8xf32>, vector<8x8xf32> -> vector<8x8xf32>
    %c0_11 = arith.constant 0 : index
    %c0_12 = arith.constant 0 : index
    %11 = vector.load %arg5[%c0_11, %c0_12] : memref<1x8xf32, #tpu.memory_space<vmem>>, vector<1x8xf32>
    %12 = vector.broadcast %11 : vector<1x8xf32> to vector<8x8xf32>
    %13 = arith.addf %10, %12 : vector<8x8xf32>
    %c0_13 = arith.constant 0 : index
    %c0_14 = arith.constant 0 : index
    %14 = vector.load %arg7[%c0_13, %c0_14] : memref<8x8xf32, #tpu.memory_space<vmem>>, vector<8x8xf32>
    tpu.vector_store %arg7[%c0_13, %c0_14], %13 {strides = array<i32>} : memref<8x8xf32, #tpu.memory_space<vmem>>, vector<8x8xf32>,
    return
  }
  func.func @transform_0(%arg0: i32) -> (i32, i32) {
    %c0_i32 = arith.constant 0 : i32
    %c0_i32_0 = arith.constant 0 : i32
    return %arg0, %c0_i32 : i32, i32
  }
  func.func @transform_1(%arg0: i32) -> (i32, i32) {
    %c0_i32 = arith.constant 0 : i32
    %c0_i32_0 = arith.constant 0 : i32
    %c0_i32_1 = arith.constant 0 : i32
    return %c0_i32, %c0_i32_0 : i32, i32
  }
  func.func @transform_2(%arg0: i32) -> (i32, i32) {
    %c0_i32 = arith.constant 0 : i32
    %c0_i32_0 = arith.constant 0 : i32
    %c0_i32_1 = arith.constant 0 : i32
    return %c0_i32, %c0_i32_0 : i32, i32
  }
  func.func @transform_3(%arg0: i32) -> (i32, i32) {
    %c0_i32 = arith.constant 0 : i32
    %c0_i32_0 = arith.constant 0 : i32
    %c0_i32_1 = arith.constant 0 : i32
    return %c0_i32, %c0_i32_0 : i32, i32
  }
  func.func @transform_4(%arg0: i32) -> (i32, i32) {
    %c0_i32 = arith.constant 0 : i32
    %c0_i32_0 = arith.constant 0 : i32
    %c0_i32_1 = arith.constant 0 : i32
    return %c0_i32, %c0_i32_0 : i32, i32
  }
  func.func @transform_5(%arg0: i32) -> (i32, i32) {
    %c0_i32 = arith.constant 0 : i32
    %c0_i32_0 = arith.constant 0 : i32
    return %arg0, %c0_i32 : i32, i32
  }
  func.func @transform_6(%arg0: i32) -> (i32, i32) {
    %c0_i32 = arith.constant 0 : i32
    %c0_i32_0 = arith.constant 0 : i32
    return %arg0, %c0_i32 : i32, i32
  }
}

</mosaic_0001>

<bundles_post_ra>
// kernel: tpu_custom_call.1
= control target key start
LH: loop header
LB: loop body
LE: loop exit
PB: predicated region body
PF: predicated region fallthrough
CT: control target
= control target key end

     0   :  { %12 = vsyncpa [#allocation3], 0  ;;  %s836_s0 = inlined_call_operand.vmem [shape: f32[16,4], index: 0, kind: input, shape index: {}]   ;;  %s837_s1 = inlined_call_operand.vmem [shape: f32[4,32], index: 1, kind: input, shape index: {}]   ;;  %s838_s2 = inlined_call_operand.vmem [shape: f32[1,32], index: 2, kind: input, shape index: {}]   ;;  %s839_s3 = inlined_call_operand.vmem [shape: f32[32,8], index: 3, kind: input, shape index: {}]   ;;  %s840_s4 = inlined_call_operand.vmem [shape: f32[1,8], index: 4, kind: input, shape index: {}]   ;;  %s841_s5 = inlined_call_operand.hbm [shape: f32[16,32], index: 5, kind: output, shape index: {0}]   ;;  %s842_s6 = inlined_call_operand.vmem [shape: f32[16,8], index: 6, kind: output, shape index: {1}]  }
   0x1   :  { %14 = vsyncpa [#allocation3 + $0x1], 0  ;;  %s718_s21 = smov 0   ;;  %s720_s22 = smov 0  }
   0x2   :  { %s722_s23 = smov 0   ;;  %s724_s24 = smov 0  }
   0x3 LB: > { %s739_s25 = sadd.s32 4294967295, %s678_s24   ;;  %s538_s26 = sadd.s32 4294967294, %s678_s24   ;;  %s678_s24 = sphi %s724_s24, %s848_s24   ;;  %s674_s23 = sphi %s722_s23, %s847_s23   ;;  %s670_s22 = sphi %s720_s22, %s846_s22   ;;  %s666_s21 = sphi %s718_s21, %s845_s21  }
   0x4   : > { %s743_s27 = sadd.s32 1, %s678_s24   ;;  %s137_s28 = sadd.s32 1, %s674_s23 }
   0x5   : > { %s134_s29 = ssub.s32 %s678_s24, %s743_s27  ;;  %p147_p0 = scmp.ne.s32.totalorder %s674_s23, %s670_s22 }
   0x6   : > { %p135_p1 = scmp.eq.s32.totalorder %s134_s29, 0  ;;  %p148_p2 = scmp.eq.s32.totalorder %s739_s25, 1 }
   0x7   : > { %p153_p3 = scmp.ne.s32.totalorder %s670_s22, %s666_s21  ;;  %p154_p4 = scmp.eq.s32.totalorder %s538_s26, 1 }
   0x8   : > { %s754_s30 = scalar_select %p135_p1, %s674_s23, %s137_s28  }
   0x9   : > { %p756_p5 = por %p148_p2, %p147_p0  ;;  %p760_p6 = por %p154_p4, %p153_p3 }
   0xa   : > { %p541_p7 = scmp.ge.s32.totalorder %s678_s24, 1  ;;  %p217_p8 = scmp.lt.s32.totalorder %s678_s24, 3 }
   0xc   : > { %p218_p9 = pnand %p541_p7, %p217_p8 }
   0xd   : > { %p250_p10 = scmp.lt.s32.totalorder (!%p218_p9), %s739_s25, 1  ;;  %s241_s9 = sand.u32 (!%p218_p9), 1, %s670_s22  }
   0xe   : > { %221 = sbr.rel (%p218_p9) target bundleno = 418 (0x1a2), region = 40  ;;  %s542_s12 = sshll.u32 (!%p218_p9), %s241_s9, 3 }
   0xf   : > { %s243_s15 = scalar_lea.vmem (!%p218_p9), [#allocation2], %s542_s12  ;;  %s551_s16 = sshll.u32 (!%p218_p9), %s739_s25, 7 }
  0x10   : > { %s450_s20 = scalar_lea.hbm (!%p218_p9), %s841_s5, %s551_s16  ;;  %s435_s26 = scalar_lea.sflag (!%p218_p9), [#allocation3], %s241_s9 }
  0x11   : > { %s682_s29 = smov (!%p218_p9), [#allocation2]  }
  0x12   : > { %s622_s10 = sshll.u32 (!%p218_p9), %s682_s29, 4  ;;  %s623_s10 = int_to_ptr.vmem [resolvable:$false] %s622_s10 }
  0x13   : > { %v259_v0 = vld [vmem:[%s837_s1] sm:$0xf]  ;;  %vm271_vm0 = vcmask 1043456   ;;  %v680_v1 = vmov 0.0   ;;  %vm681_vm1 = vmmov 0   ;;  %v351_v2 = vld [vmem:[%s839_s3 + $0x18] sm:$0xff] }
  0x14   : > { %561 = vmatprep.subr.mxu0 %v680_v1  ;;  %563 = vmatprep.mubr.msk.f32.mxu0 %vm681_vm1, %v680_v1  ;;  %s774_s13 = scalar_select %p250_p10, %s739_s25, 1  ;;  %vm267_vm2 = vcmask 31744   ;;  %v350_v4 = vld [vmem:[%s839_s3 + $0x10] sm:$0xff]  ;;  %v349_v5 = vld [vmem:[%s839_s3 + $0x8] sm:$0xff]  ;;  %v348_v6 = vld [vmem:[%s839_s3] sm:$0xff]  ;;  %vm346_vm3 = vcmask 261120  }
  0x15   : > { %562 = vmatpush3.msk.msra.mxu0 %vm271_vm0, %v259_v0  ;;  %566 = vmatprep.subr.mxu1 %v680_v1  ;;  %v545_v7 = vld [vmem:[%s838_s2] ss:$0 sm:$0xff]  ;;  %s624_s11 = scalar_lea.vmem %s623_s10, 256 }
  0x16   : > { %567 = vmatpush3.msra.mxu1 %v351_v2  ;;  %574 = vmatprep.mubr.msk.f32.mxu1 %vm681_vm1, %v680_v1  ;;  %s543_s14 = sshll.u32 %s774_s13, 3 }
  0x17   : > { %568 = vmatprep.subr.mxu1 %v680_v1  ;;  %s253_s17 = scalar_lea.vmem %s836_s0, %s543_s14 }
  0x18   : > { %v258_v3 = vld [vmem:[%s253_s17] sm:$0xff]  ;;  %569 = vmatpush3.msra.mxu1 %v350_v4  ;;  %s452_s17 = sshll.u32 %s243_s15, 4  ;;  %s453_s17 = int_to_ptr.vmem [resolvable:$true] %s452_s17 }
  0x19   : > { %564 = vmatmul.mubr.msk.f32.vlgmr.msra.gmra.mxu0 %vm267_vm2, %v258_v3  ;;  %570 = vmatprep.subr.mxu1 %v680_v1  ;;  %s618_s28 = scalar_lea.vmem %s453_s17, 128  ;;  %p625_p0 = scmp.lt.s32.totalorder %s453_s17, %s623_s10 }
  0x1a   : > { %571 = vmatpush3.msra.mxu1 %v349_v5  ;;  %p619_p11 = scmp.ne.s32.totalorder %s453_s17, %s618_s28  ;;  %p626_p1 = scmp.lt.s32.totalorder %s624_s11, %s618_s28 }
  0x1b   : > { %572 = vmatprep.subr.mxu1 %v680_v1 }
  0x1c   : > { %573 = vmatpush3.msra.mxu1 %v348_v6  ;;  %p620_p12 = pnand %p619_p11, %p756_p5  ;;  %p627_p2 = por %p626_p1, %p625_p0 }
  0x1e   : > { %p621_p13 = pneg %p620_p12 }
  0x20   : > { %p628_p3 = pnand %p627_p2, %p621_p13 }
  0xd9   : > { %v341_v8 = vpop.f32.mrf.mxu0 }
  0xda   : > { %v342_v9 = vadd.f32 %v545_v7, %v341_v8 }
  0xdb   : > { %v565_v10 = vpop.f32.mrf.mxu0 }
  0xdc   : > { %v345_v11 = vmax.f32 %v342_v9, 0.0 }
  0xde   : > { %575 = vmatmul.mubr.msk.f32.vlgmr.msra.gmra.mxu1 %vm346_vm3, %v345_v11  ;;  %347 = vst.msk [vmem:[%s243_s15] sm:$0xff] %vm346_vm3, %v345_v11 }
  0xdf   : > { %631 = shalt.err (!%p628_p3)
}
  0xe0   : > { %s632_s25 = scalar_lea.hbm %s450_s20, 128  ;;  %s636_s15 = scalar_lea.hbm %s841_s5, 256 }
  0xe1   : > { %p633_p4 = scmp.ne.s32.totalorder %s450_s20, %s632_s25  ;;  %p637_p9 = scmp.lt.s32.totalorder %s450_s20, %s841_s5 }
  0xe2   : > { %p638_p10 = scmp.lt.s32.totalorder %s636_s15, %s632_s25 }
  0xe3   : > { %p634_p7 = pnand %p633_p4, %p756_p5 }
  0xe4   : > { %p639_p11 = por %p638_p10, %p637_p9 }
  0xe5   : > { %p635_p8 = pneg %p634_p7 }
  0xe7   : > { %p640_p12 = pnand %p639_p11, %p635_p8 }
  0xe9   : > { %643 = shalt.err (!%p640_p12)
}
  0xea   : > { %577 = dma.vmem_to_hbm [thread:$0]  (%p756_p5), %s453_s17, 128, %s450_s20, %s435_s26   ;;  %v548_v12 = vld [vmem:[%s840_s4] ss:$0 sm:$0xff]  ;;  %vm432_vm4 = vcmask 64512  }
  0xeb   : > { %s257_s11 = scalar_lea.vmem %s842_s6, %s543_s14 }
 0x19e   : > { %v428_v13 = vpop.f32.mrf.mxu1 }
 0x19f   : > { %v429_v14 = vadd.f32 %v548_v12, %v428_v13 }
 0x1a0   : > { %v576_v15 = vpop.f32.mrf.mxu1 }
 0x1a1   : > { %433 = vst.msk [vmem:[%s257_s11] sm:$0xff] %vm432_vm4, %v429_v14 }
 0x1a2 PF: > { %p583_p13 = scmp.ge.s32.totalorder %s678_s24, 2  ;;  %s467_s7 = sand.u32 1, %s666_s21  }
 0x1a3   : > { %s468_s17 = scalar_lea.sflag [#allocation3], %s467_s7 }
 0x1a4   : > { %p580_p5 = pnand %p583_p13, %p760_p6 }
 0x1a6   : > { %p581_p0 = pneg %p580_p5 }
 0x1a8   : > { %661 = dma.done.wait (%p581_p0), %s468_s17, 128  }
 0x1a9   : > { %663 = vsyncadd (%p581_p0), %s468_s17, 4294967168  ;;  %p17_p1 = scmp.ge.s32.totalorder %s743_s27, 4   ;;  %s845_s21 = smov %s670_s22 }
 0x1aa   : > { %s846_s22 = smov %s674_s23  ;;  %s847_s23 = smov %s754_s30 }
 0x1ab   : > { %s848_s24 = smov %s743_s27  ;;  %19 = sbr.rel (!%p17_p1) target bundleno = 3 (0x3), region = 87 }
 0x1b0   :  { %480 = vsyncpa [#allocation3], 1 }
 0x1b1   :  { %482 = vsyncpa [#allocation3 + $0x1], 1 }

</bundles_post_ra>
